<compile_context>
chip_gen: v5e
topology: v5e:2x2
jax: 0.10.0
libtpu: 0.0.40
codegen_flags: <defaults>
</compile_context>

<pallas_src>
from functools import partial

import jax
import jax.numpy as jnp
from jax.experimental import pallas as pl
from jax.experimental.pallas import tpu as pltpu


def _round_up(n: int, m: int) -> int:
    return ((n + m - 1) // m) * m


def _mlp_kernel(x_ref, w1_ref, w23_ref, b_ref, o_ref):
    # x:   (tb, D_IN)                 f32
    # w1:  (D_IN, HID_PAD)            f32 or bf16
    # w23: (2, HID_PAD, HID_PAD)      f32 or bf16   [w2, w3]
    # b:   (3, 1, HID_PAD)            f32           [b1, b2, b3]
    # o:   (tb, OUT_PAD == HID_PAD)   f32
    x = x_ref[...].astype(w1_ref.dtype)
    h1 = jnp.dot(x, w1_ref[...], preferred_element_type=jnp.float32) + b_ref[0]
    h1 = jnp.maximum(h1, 0.0)                                          # ReLU
    h2 = jnp.dot(h1.astype(w23_ref.dtype), w23_ref[0],
                 preferred_element_type=jnp.float32) + b_ref[1]
    h2 = jnp.tanh(h2)                                                  # Tanh
    out = jnp.dot(h2.astype(w23_ref.dtype), w23_ref[1],
                  preferred_element_type=jnp.float32) + b_ref[2]
    o_ref[...] = jnp.maximum(out, 0.0).astype(o_ref.dtype)             # ReLU


@partial(jax.jit, static_argnames=("use_bf16",))
def fashion_mnist_model_v1(x_nchw, w1, b1, w2, b2, w3, b3, use_bf16=False):
    """Forward pass of FashionMNISTModelV1.

    x_nchw: (B, C, H, W) float32  ->  logits (B, output_shape) float32
    Weights stored as (fan_in, fan_out) so the kernel computes x @ W (== x @ W_torch.T).
    """
    B = x_nchw.shape[0]
    x2d = x_nchw.reshape(B, -1).astype(jnp.float32)        # nn.Flatten(); no HBM copy
    d_in = x2d.shape[1]
    hid = w1.shape[1]
    out_dim = w3.shape[1]

    HID_PAD = _round_up(hid, 128)
    OUT_PAD = _round_up(out_dim, 128)
    # Stacked square layer-2/3 buffer requires the (padded) output width to match
    # the padded hidden width; otherwise weight columns would be silently dropped.
    assert out_dim <= HID_PAD and OUT_PAD == HID_PAD, (
        "output_shape must fit within the padded hidden width (<=128 for hidden<=128)")

    w_dtype = jnp.bfloat16 if use_bf16 else jnp.float32

    # ---- pack parameters (zero padding keeps padded lanes exactly zero) ----
    w1p = jnp.zeros((d_in, HID_PAD), w_dtype).at[:, :hid].set(w1.astype(w_dtype))
    w2p = jnp.zeros((HID_PAD, HID_PAD), w_dtype).at[:hid, :hid].set(w2.astype(w_dtype))
    w3p = jnp.zeros((HID_PAD, HID_PAD), w_dtype).at[:hid, :out_dim].set(w3.astype(w_dtype))
    w23p = jnp.stack([w2p, w3p])                            # (2, HID_PAD, HID_PAD)

    bz = jnp.zeros((1, HID_PAD), jnp.float32)
    b1p = bz.at[0, :hid].set(b1.astype(jnp.float32))
    b2p = bz.at[0, :hid].set(b2.astype(jnp.float32))
    b3p = bz.at[0, :out_dim].set(b3.astype(jnp.float32))
    bsp = jnp.stack([b1p, b2p, b3p])                        # (3, 1, HID_PAD), f32

    out_shape = jax.ShapeDtypeStruct((B, OUT_PAD), jnp.float32)
    cost = pl.CostEstimate(
        flops=2 * B * (d_in * HID_PAD + HID_PAD * HID_PAD + HID_PAD * OUT_PAD),
        transcendentals=B * HID_PAD,
        bytes_accessed=(x2d.size * x2d.dtype.itemsize
                        + w1p.size * w1p.dtype.itemsize
                        + w23p.size * w23p.dtype.itemsize
                        + bsp.size * 4
                        + B * OUT_PAD * 4),
    )

    TB_MAX = 512   # ~5 MiB total VMEM incl. double buffers; fits every generation
    if B <= 64:
        # Tiny problem: single whole-array invocation, no grid bookkeeping.
        out_pad = pl.pallas_call(
            _mlp_kernel,
            out_shape=out_shape,
            cost_estimate=cost,
        )(x2d, w1p, w23p, bsp)
        return out_pad[:, :out_dim]

    # Medium/large batch: tile the batch axis, keep weights VMEM-resident via a
    # constant index_map, and keep the tile count even so v7x's two TensorCores
    # stay balanced.  The ragged last tile is handled by Pallas boundary clipping.
    tb = min(TB_MAX, _round_up(pl.cdiv(B, 2), 8))
    num_tiles = pl.cdiv(B, tb)
    if num_tiles > 1 and num_tiles % 2 == 1:
        tb = _round_up(pl.cdiv(B, num_tiles + 1), 8)
        num_tiles = pl.cdiv(B, tb)

    out_pad = pl.pallas_call(
        _mlp_kernel,
        out_shape=out_shape,
        grid=(num_tiles,),
        in_specs=[
            pl.BlockSpec((tb, d_in), lambda i: (i, 0)),          # full-extent last dim
            pl.BlockSpec((d_in, HID_PAD), lambda i: (0, 0)),     # resident across grid
            pl.BlockSpec((2, HID_PAD, HID_PAD), lambda i: (0, 0, 0)),
            pl.BlockSpec((3, 1, HID_PAD), lambda i: (0, 0, 0)),
        ],
        out_specs=pl.BlockSpec((tb, OUT_PAD), lambda i: (i, 0)),
        compiler_params=pltpu.CompilerParams(
            dimension_semantics=("parallel",)),
        cost_estimate=cost,
    )(x2d, w1p, w23p, bsp)
    return out_pad[:, :out_dim]


def _init_linear(key, fan_in, fan_out):
    # Mimic torch.nn.Linear default init: U(-1/sqrt(fan_in), 1/sqrt(fan_in)).
    kw, kb = jax.random.split(key)
    bound = 1.0 / jnp.sqrt(jnp.float32(fan_in))
    w = jax.random.uniform(kw, (fan_in, fan_out), jnp.float32, -bound, bound)
    b = jax.random.uniform(kb, (fan_out,), jnp.float32, -bound, bound)
    return w, b


def _reference(x_nchw, w1, b1, w2, b2, w3, b3):
    x = x_nchw.reshape(x_nchw.shape[0], -1)
    h1 = jnp.maximum(x @ w1 + b1, 0.0)
    h2 = jnp.tanh(h1 @ w2 + b2)
    return jnp.maximum(h2 @ w3 + b3, 0.0)


if __name__ == "__main__":
    # FashionMNIST-like shapes: 1x28x28 images -> input_shape=784,
    # hidden_units=32, output_shape=10.
    C, H, W = 1, 28, 28
    input_shape = C * H * W
    hidden_units = 32
    output_shape = 10

    key = jax.random.PRNGKey(0)
    kx, k1, k2, k3, kx2 = jax.random.split(key, 5)

    w1, b1 = _init_linear(k1, input_shape, hidden_units)
    w2, b2 = _init_linear(k2, hidden_units, hidden_units)
    w3, b3 = _init_linear(k3, hidden_units, output_shape)

    # --- small batch: exercises the single-call path ---
    B_small = 8
    x_small = jax.random.normal(kx, (B_small, C, H, W), jnp.float32)
    out_small = jax.block_until_ready(
        fashion_mnist_model_v1(x_small, w1, b1, w2, b2, w3, b3))
    ref_small = _reference(x_small, w1, b1, w2, b2, w3, b3)
    assert out_small.shape == (B_small, output_shape)
    assert jnp.allclose(out_small, ref_small, atol=1e-5, rtol=1e-5)

    # --- larger batch: exercises the gridded path (even tile count, ragged last tile) ---
    B_large = 200
    x_large = jax.random.normal(kx2, (B_large, C, H, W), jnp.float32)
    out_large = jax.block_until_ready(
        fashion_mnist_model_v1(x_large, w1, b1, w2, b2, w3, b3))
    ref_large = _reference(x_large, w1, b1, w2, b2, w3, b3)
    assert out_large.shape == (B_large, output_shape)
    assert jnp.allclose(out_large, ref_large, atol=1e-5, rtol=1e-5)

    print("KERNEL_OK")
</pallas_src>

<mosaic_0001>
module attributes {stable_mosaic.version = 11 : i64} {
  func.func @_mlp_kernel(%arg0: memref<8x784xf32, #tpu.memory_space<vmem>>, %arg1: memref<784x128xf32, #tpu.memory_space<vmem>>, %arg2: memref<2x128x128xf32, #tpu.memory_space<vmem>>, %arg3: memref<3x1x128xf32, #tpu.memory_space<vmem>>, %arg4: memref<8x128xf32, #tpu.memory_space<vmem>>) attributes {dimension_semantics = [], scalar_prefetch = 0 : i64, scratch_operands = 0 : i64, tpu.core_type = #tpu.core_type<tc>} {
    %c0 = arith.constant 0 : index
    %c0_0 = arith.constant 0 : index
    %0 = vector.load %arg0[%c0, %c0_0] : memref<8x784xf32, #tpu.memory_space<vmem>>, vector<8x784xf32>
    %c0_1 = arith.constant 0 : index
    %c0_2 = arith.constant 0 : index
    %1 = vector.load %arg1[%c0_1, %c0_2] : memref<784x128xf32, #tpu.memory_space<vmem>>, vector<784x128xf32>
    %cst = arith.constant dense<0.000000e+00> : vector<8x128xf32>
    %2 = tpu.matmul %0, %1, %cst {dimension_numbers = #tpu.dot_dimension_numbers<[1], [0], [0], [1], [0, 0, 1, 1], [], []>} : vector<8x784xf32>, vector<784x128xf32>, vector<8x128xf32> -> vector<8x128xf32>
    %c0_3 = arith.constant 0 : index
    %c0_4 = arith.constant 0 : index
    %c0_5 = arith.constant 0 : index
    %3 = vector.load %arg3[%c0_3, %c0_4, %c0_5] : memref<3x1x128xf32, #tpu.memory_space<vmem>>, vector<1x1x128xf32>
    %4 = vector.shape_cast %3 : vector<1x1x128xf32> to vector<1x128xf32>
    %5 = vector.broadcast %4 : vector<1x128xf32> to vector<8x128xf32>
    %6 = arith.addf %2, %5 : vector<8x128xf32>
    %cst_6 = arith.constant 0.000000e+00 : f32
    %7 = vector.broadcast %cst_6 : f32 to vector<8x128xf32>
    %8 = arith.maximumf %6, %7 : vector<8x128xf32>
    %c0_7 = arith.constant 0 : index
    %c0_8 = arith.constant 0 : index
    %c0_9 = arith.constant 0 : index
    %9 = vector.load %arg2[%c0_7, %c0_8, %c0_9] : memref<2x128x128xf32, #tpu.memory_space<vmem>>, vector<1x128x128xf32>
    %10 = vector.shape_cast %9 : vector<1x128x128xf32> to vector<128x128xf32>
    %cst_10 = arith.constant dense<0.000000e+00> : vector<8x128xf32>
    %11 = tpu.matmul %8, %10, %cst_10 {dimension_numbers = #tpu.dot_dimension_numbers<[1], [0], [0], [1], [0, 0, 1, 1], [], []>} : vector<8x128xf32>, vector<128x128xf32>, vector<8x128xf32> -> vector<8x128xf32>
    %c1 = arith.constant 1 : index
    %c0_11 = arith.constant 0 : index
    %c0_12 = arith.constant 0 : index
    %12 = vector.load %arg3[%c1, %c0_11, %c0_12] : memref<3x1x128xf32, #tpu.memory_space<vmem>>, vector<1x1x128xf32>
    %13 = vector.shape_cast %12 : vector<1x1x128xf32> to vector<1x128xf32>
    %14 = vector.broadcast %13 : vector<1x128xf32> to vector<8x128xf32>
    %15 = arith.addf %11, %14 : vector<8x128xf32>
    %16 = math.tanh %15 : vector<8x128xf32>
    %c1_13 = arith.constant 1 : index
    %c0_14 = arith.constant 0 : index
    %c0_15 = arith.constant 0 : index
    %17 = vector.load %arg2[%c1_13, %c0_14, %c0_15] : memref<2x128x128xf32, #tpu.memory_space<vmem>>, vector<1x128x128xf32>
    %18 = vector.shape_cast %17 : vector<1x128x128xf32> to vector<128x128xf32>
    %cst_16 = arith.constant dense<0.000000e+00> : vector<8x128xf32>
    %19 = tpu.matmul %16, %18, %cst_16 {dimension_numbers = #tpu.dot_dimension_numbers<[1], [0], [0], [1], [0, 0, 1, 1], [], []>} : vector<8x128xf32>, vector<128x128xf32>, vector<8x128xf32> -> vector<8x128xf32>
    %c2 = arith.constant 2 : index
    %c0_17 = arith.constant 0 : index
    %c0_18 = arith.constant 0 : index
    %20 = vector.load %arg3[%c2, %c0_17, %c0_18] : memref<3x1x128xf32, #tpu.memory_space<vmem>>, vector<1x1x128xf32>
    %21 = vector.shape_cast %20 : vector<1x1x128xf32> to vector<1x128xf32>
    %22 = vector.broadcast %21 : vector<1x128xf32> to vector<8x128xf32>
    %23 = arith.addf %19, %22 : vector<8x128xf32>
    %cst_19 = arith.constant 0.000000e+00 : f32
    %24 = vector.broadcast %cst_19 : f32 to vector<8x128xf32>
    %25 = arith.maximumf %23, %24 : vector<8x128xf32>
    %c0_20 = arith.constant 0 : index
    %c0_21 = arith.constant 0 : index
    %26 = vector.load %arg4[%c0_20, %c0_21] : memref<8x128xf32, #tpu.memory_space<vmem>>, vector<8x128xf32>
    tpu.vector_store %arg4[%c0_20, %c0_21], %25 {strides = array<i32>} : memref<8x128xf32, #tpu.memory_space<vmem>>, vector<8x128xf32>,
    return
  }
}

</mosaic_0001>

<bundles_post_ra>
// kernel: fashion_mnist_model_v1.1
= control target key start
LH: loop header
LB: loop body
LE: loop exit
PB: predicated region body
PF: predicated region fallthrough
CT: control target
= control target key end

     0   :  { %s874_s0 = inlined_call_operand.vmem [shape: f32[8,784], index: 0, kind: input, shape index: {}]   ;;  %s875_s1 = inlined_call_operand.vmem [shape: f32[784,128], index: 1, kind: input, shape index: {}]   ;;  %s876_s2 = inlined_call_operand.vmem [shape: f32[2,128,128], index: 2, kind: input, shape index: {}]   ;;  %s877_s3 = inlined_call_operand.vmem [shape: f32[3,1,128], index: 3, kind: input, shape index: {}]   ;;  %s878_s4 = inlined_call_operand.hbm [shape: f32[8,128], index: 4, kind: output, shape index: {}]  }
   0x1   :  { %v40_v0 = vld [vmem:[%s875_s1 + $0x78] sm:$0xff]  ;;  %v39_v1 = vld [vmem:[%s875_s1 + $0x70] sm:$0xff]  ;;  %v38_v4 = vld [vmem:[%s875_s1 + $0x68] sm:$0xff] }
   0x2   :  { %v56_v2 = vld [vmem:[%s875_s1 + $0xf8] sm:$0xff]  ;;  %131 = vmatpush.msra.mxu0 %v40_v0  ;;  %v55_v3 = vld [vmem:[%s875_s1 + $0xf0] sm:$0xff]  ;;  %v54_v5 = vld [vmem:[%s875_s1 + $0xe8] sm:$0xff] }
   0x3   :  { %151 = vmatpush.msra.mxu1 %v56_v2  ;;  %v37_v6 = vld [vmem:[%s875_s1 + $0x60] sm:$0xff]  ;;  %v36_v8 = vld [vmem:[%s875_s1 + $0x58] sm:$0xff]  ;;  %v35_v10 = vld [vmem:[%s875_s1 + $0x50] sm:$0xff] }
   0x4   :  { %132 = vmatpush.msra.mxu0 %v39_v1  ;;  %v53_v7 = vld [vmem:[%s875_s1 + $0xe0] sm:$0xff]  ;;  %v52_v9 = vld [vmem:[%s875_s1 + $0xd8] sm:$0xff]  ;;  %v51_v12 = vld [vmem:[%s875_s1 + $0xd0] sm:$0xff] }
   0x5   :  { %152 = vmatpush.msra.mxu1 %v55_v3  ;;  %v72_v11 = vld [vmem:[%s875_s1 + $0x178] sm:$0xff]  ;;  %v71_v13 = vld [vmem:[%s875_s1 + $0x170] sm:$0xff]  ;;  %v70_v15 = vld [vmem:[%s875_s1 + $0x168] sm:$0xff] }
   0x6   :  { %133 = vmatpush.msra.mxu0 %v38_v4  ;;  %171 = vmatpush.msra.mxu2 %v72_v11  ;;  %v88_v14 = vld [vmem:[%s875_s1 + $0x1f8] sm:$0xff]  ;;  %v87_v16 = vld [vmem:[%s875_s1 + $0x1f0] sm:$0xff]  ;;  %v34_v17 = vld [vmem:[%s875_s1 + $0x48] sm:$0xff] }
   0x7   :  { %153 = vmatpush.msra.mxu1 %v54_v5  ;;  %v50_v18 = vld [vmem:[%s875_s1 + $0xc8] sm:$0xff]  ;;  %191 = vmatpush.msra.mxu3 %v88_v14  ;;  %v69_v19 = vld [vmem:[%s875_s1 + $0x160] sm:$0xff]  ;;  %v68_v23 = vld [vmem:[%s875_s1 + $0x158] sm:$0xff] }
   0x8   :  { %134 = vmatpush.msra.mxu0 %v37_v6  ;;  %172 = vmatpush.msra.mxu2 %v71_v13  ;;  %v86_v20 = vld [vmem:[%s875_s1 + $0x1e8] sm:$0xff]  ;;  %v33_v21 = vld [vmem:[%s875_s1 + $0x40] sm:$0xff]  ;;  %v32_v25 = vld [vmem:[%s875_s1 + $0x38] sm:$0xff] }
   0x9   :  { %154 = vmatpush.msra.mxu1 %v53_v7  ;;  %v49_v22 = vld [vmem:[%s875_s1 + $0xc0] sm:$0xff]  ;;  %192 = vmatpush.msra.mxu3 %v87_v16  ;;  %v48_v26 = vld [vmem:[%s875_s1 + $0xb8] sm:$0xff]  ;;  %v67_v27 = vld [vmem:[%s875_s1 + $0x150] sm:$0xff] }
   0xa   :  { %135 = vmatpush.msra.mxu0 %v36_v8  ;;  %173 = vmatpush.msra.mxu2 %v70_v15  ;;  %v85_v24 = vld [vmem:[%s875_s1 + $0x1e0] sm:$0xff]  ;;  %v84_v28 = vld [vmem:[%s875_s1 + $0x1d8] sm:$0xff]  ;;  %v31_v29 = vld [vmem:[%s875_s1 + $0x30] sm:$0xff] }
   0xb   :  { %155 = vmatpush.msra.mxu1 %v52_v9  ;;  %193 = vmatpush.msra.mxu3 %v86_v20  ;;  %v47_v30 = vld [vmem:[%s875_s1 + $0xb0] sm:$0xff]  ;;  %v66_v31 = vld [vmem:[%s875_s1 + $0x148] sm:$0xff]  ;;  %v65_v35 = vld [vmem:[%s875_s1 + $0x140] sm:$0xff] }
   0xc   :  { %136 = vmatpush.msra.mxu0 %v35_v10  ;;  %174 = vmatpush.msra.mxu2 %v69_v19  ;;  %v83_v32 = vld [vmem:[%s875_s1 + $0x1d0] sm:$0xff]  ;;  %v30_v33 = vld [vmem:[%s875_s1 + $0x28] sm:$0xff]  ;;  %v29_v37 = vld [vmem:[%s875_s1 + $0x20] sm:$0xff] }
   0xd   :  { %156 = vmatpush.msra.mxu1 %v51_v12  ;;  %194 = vmatpush.msra.mxu3 %v85_v24  ;;  %v46_v34 = vld [vmem:[%s875_s1 + $0xa8] sm:$0xff]  ;;  %v45_v38 = vld [vmem:[%s875_s1 + $0xa0] sm:$0xff]  ;;  %v64_v39 = vld [vmem:[%s875_s1 + $0x138] sm:$0xff] }
   0xe   :  { %137 = vmatpush.msra.mxu0 %v34_v17  ;;  %175 = vmatpush.msra.mxu2 %v68_v23  ;;  %v82_v36 = vld [vmem:[%s875_s1 + $0x1c8] sm:$0xff]  ;;  %v81_v40 = vld [vmem:[%s875_s1 + $0x1c0] sm:$0xff]  ;;  %v28_v41 = vld [vmem:[%s875_s1 + $0x18] sm:$0xff] }
   0xf   :  { %157 = vmatpush.msra.mxu1 %v50_v18  ;;  %195 = vmatpush.msra.mxu3 %v84_v28  ;;  %v44_v42 = vld [vmem:[%s875_s1 + $0x98] sm:$0xff]  ;;  %v63_v43 = vld [vmem:[%s875_s1 + $0x130] sm:$0xff]  ;;  %v62_v47 = vld [vmem:[%s875_s1 + $0x128] sm:$0xff] }
  0x10   :  { %138 = vmatpush.msra.mxu0 %v33_v21  ;;  %176 = vmatpush.msra.mxu2 %v67_v27  ;;  %v80_v44 = vld [vmem:[%s875_s1 + $0x1b8] sm:$0xff]  ;;  %v27_v45 = vld [vmem:[%s875_s1 + $0x10] sm:$0xff]  ;;  %v26_v49 = vld [vmem:[%s875_s1 + $0x8] sm:$0xff] }
  0x11   :  { %158 = vmatpush.msra.mxu1 %v49_v22  ;;  %196 = vmatpush.msra.mxu3 %v83_v32  ;;  %v43_v46 = vld [vmem:[%s875_s1 + $0x90] sm:$0xff]  ;;  %v42_v50 = vld [vmem:[%s875_s1 + $0x88] sm:$0xff]  ;;  %v61_v51 = vld [vmem:[%s875_s1 + $0x120] sm:$0xff] }
  0x12   :  { %139 = vmatpush.msra.mxu0 %v32_v25  ;;  %177 = vmatpush.msra.mxu2 %v66_v31  ;;  %v79_v48 = vld [vmem:[%s875_s1 + $0x1b0] sm:$0xff]  ;;  %v78_v52 = vld [vmem:[%s875_s1 + $0x1a8] sm:$0xff]  ;;  %v25_v53 = vld [vmem:[%s875_s1] sm:$0xff] }
  0x13   :  { %159 = vmatpush.msra.mxu1 %v48_v26  ;;  %197 = vmatpush.msra.mxu3 %v82_v36  ;;  %v41_v54 = vld [vmem:[%s875_s1 + $0x80] sm:$0xff]  ;;  %v104_v55 = vld [vmem:[%s875_s1 + $0x278] sm:$0xff]  ;;  %v103_v59 = vld [vmem:[%s875_s1 + $0x270] sm:$0xff] }
  0x14   :  { %140 = vmatpush.msra.mxu0 %v31_v29  ;;  %178 = vmatpush.msra.mxu2 %v65_v35  ;;  %v120_v56 = vld [vmem:[%s875_s1 + $0x2f8] sm:$0xff]  ;;  %v77_v58 = vld [vmem:[%s875_s1 + $0x1a0] sm:$0xff]  ;;  %v119_v60 = vld [vmem:[%s875_s1 + $0x2f0] sm:$0xff] }
  0x15   :  { %160 = vmatpush.msra.mxu1 %v47_v30  ;;  %198 = vmatpush.msra.mxu3 %v81_v40  ;;  %v60_v57 = vld [vmem:[%s875_s1 + $0x118] sm:$0xff]  ;;  %v59_v61 = vld [vmem:[%s875_s1 + $0x110] sm:$0xff]  ;;  %v102_v63 = vld [vmem:[%s875_s1 + $0x268] sm:$0xff] }
  0x16   :  { %141 = vmatpush.msra.mxu0 %v30_v33  ;;  %179 = vmatpush.msra.mxu2 %v64_v39  ;;  %v76_v62 = vld [vmem:[%s875_s1 + $0x198] sm:$0xff]  ;;  %v118_v0 = vld [vmem:[%s875_s1 + $0x2e8] sm:$0xff]  ;;  %v75_v2 = vld [vmem:[%s875_s1 + $0x190] sm:$0xff] }
  0x17   :  { %161 = vmatpush.msra.mxu1 %v46_v34  ;;  %199 = vmatpush.msra.mxu3 %v80_v44  ;;  %v58_v1 = vld [vmem:[%s875_s1 + $0x108] sm:$0xff]  ;;  %v101_v3 = vld [vmem:[%s875_s1 + $0x260] sm:$0xff]  ;;  %v100_v4 = vld [vmem:[%s875_s1 + $0x258] sm:$0xff] }
  0x18   :  { %142 = vmatpush.msra.mxu0 %v29_v37  ;;  %180 = vmatpush.msra.mxu2 %v63_v43  ;;  %v117_v5 = vld [vmem:[%s875_s1 + $0x2e0] sm:$0xff]  ;;  %v116_v6 = vld [vmem:[%s875_s1 + $0x2d8] sm:$0xff]  ;;  %v74_v8 = vld [vmem:[%s875_s1 + $0x188] sm:$0xff] }
  0x19   :  { %162 = vmatpush.msra.mxu1 %v45_v38  ;;  %200 = vmatpush.msra.mxu3 %v79_v48  ;;  %v57_v7 = vld [vmem:[%s875_s1 + $0x100] sm:$0xff]  ;;  %v20_v9 = vld [vmem:[%s874_s0 + $0x10] sm:$0xff] }
  0x1a   :  { %143 = vmatpush.msra.mxu0 %v28_v41  ;;  %181 = vmatpush.msra.mxu2 %v62_v47  ;;  %v73_v10 = vld [vmem:[%s875_s1 + $0x180] sm:$0xff] }
  0x1b   :  { %163 = vmatpush.msra.mxu1 %v44_v42  ;;  %201 = vmatpush.msra.mxu3 %v78_v52 }
  0x1c   :  { %144 = vmatpush.msra.mxu0 %v27_v45  ;;  %182 = vmatpush.msra.mxu2 %v61_v51 }
  0x1d   :  { %164 = vmatpush.msra.mxu1 %v43_v46  ;;  %202 = vmatpush.msra.mxu3 %v77_v58 }
  0x1e   :  { %145 = vmatpush.msra.mxu0 %v26_v49  ;;  %183 = vmatpush.msra.mxu2 %v60_v57 }
  0x1f   :  { %165 = vmatpush.msra.mxu1 %v42_v50  ;;  %203 = vmatpush.msra.mxu3 %v76_v62 }
  0x20   :  { %146 = vmatpush.msra.mxu0 %v25_v53  ;;  %184 = vmatpush.msra.mxu2 %v59_v61 }
  0x21   :  { %166 = vmatpush.msra.mxu1 %v41_v54  ;;  %204 = vmatpush.msra.mxu3 %v75_v2 }
  0x22   :  { %211 = vmatpush.msrb.mxu0 %v104_v55  ;;  %185 = vmatpush.msra.mxu2 %v58_v1 }
  0x23   :  { %231 = vmatpush.msrb.mxu1 %v120_v56 }
  0x24   :  { %212 = vmatpush.msrb.mxu0 %v103_v59 }
  0x25   :  { %232 = vmatpush.msrb.mxu1 %v119_v60 }
  0x26   :  { %213 = vmatpush.msrb.mxu0 %v102_v63 }
  0x27   :  { %233 = vmatpush.msrb.mxu1 %v118_v0 }
  0x28   :  { %214 = vmatpush.msrb.mxu0 %v101_v3 }
  0x29   :  { %234 = vmatpush.msrb.mxu1 %v117_v5 }
  0x2a   :  { %9 = vsyncpa [#allocation3], 0  ;;  %v99_v11 = vld [vmem:[%s875_s1 + $0x250] sm:$0xff]  ;;  %186 = vmatpush.msra.mxu2 %v57_v7  ;;  %205 = vmatpush.msra.mxu3 %v74_v8  ;;  %v122_v13 = vld [vmem:[%s875_s1 + $0x308] sm:$0xff]  ;;  %vm127_vm0 = vcmask 130048   ;;  %s425_s5 = smov [#allocation2]  }
  0x2b   :  { %v115_v12 = vld [vmem:[%s875_s1 + $0x2d0] sm:$0xff]  ;;  %215 = vmatpush.msrb.mxu0 %v100_v4  ;;  %235 = vmatpush.msrb.mxu1 %v116_v6  ;;  %v18_v14 = vld [vmem:[%s874_s0] sm:$0xff]  ;;  %v98_v15 = vld [vmem:[%s875_s1 + $0x248] sm:$0xff]  ;;  %s363_s6 = sshll.u32 %s425_s5, 4  ;;  %s365_s7 = sshll.u32 %s878_s4, 4  ;;  %s364_s6 = int_to_ptr.vmem [resolvable:$true] %s363_s6  ;;  %s366_s7 = int_to_ptr.hbm [resolvable:$true] %s365_s7 }
  0x2c   :  { %v114_v16 = vld [vmem:[%s875_s1 + $0x2c8] sm:$0xff]  ;;  %187 = vmatmul.f32.vlgmr.msra.gmra.mxu2 %v20_v9  ;;  %206 = vmatpush.msra.mxu3 %v73_v10  ;;  %v21_v17 = vld [vmem:[%s874_s0 + $0x18] sm:$0xff]  ;;  %v97_v19 = vld [vmem:[%s875_s1 + $0x240] sm:$0xff] }
  0x2d   :  { %216 = vmatpush.msrb.mxu0 %v99_v11  ;;  %236 = vmatpush.msrb.mxu1 %v115_v12  ;;  %v19_v18 = vld [vmem:[%s874_s0 + $0x8] sm:$0xff]  ;;  %v113_v20 = vld [vmem:[%s875_s1 + $0x2c0] sm:$0xff]  ;;  %v287_v22 = vld [vmem:[%s876_s2 + $0x78] sm:$0xff] }
  0x2e   :  { %265 = vmatpush.msrb.mxu2 %v122_v13  ;;  %147 = vmatmul.f32.vlgmr.msra.gmra.mxu0 %v18_v14  ;;  %v121_v21 = vld [vmem:[%s875_s1 + $0x300] sm:$0xff]  ;;  %v96_v23 = vld [vmem:[%s875_s1 + $0x238] sm:$0xff]  ;;  %v24_v25 = vld [vmem:[%s874_s0 + $0x30] sm:$0xff] }
  0x2f   :  { %217 = vmatpush.msrb.mxu0 %v98_v15  ;;  %237 = vmatpush.msrb.mxu1 %v114_v16  ;;  %v112_v24 = vld [vmem:[%s875_s1 + $0x2b8] sm:$0xff]  ;;  %v286_v26 = vld [vmem:[%s876_s2 + $0x70] sm:$0xff]  ;;  %v285_v29 = vld [vmem:[%s876_s2 + $0x68] sm:$0xff] }
  0x30   :  { %207 = vmatmul.f32.vlgmr.msra.gmra.mxu3 %v21_v17  ;;  %167 = vmatmul.f32.vlgmr.msra.gmra.mxu1 %v19_v18  ;;  %v95_v27 = vld [vmem:[%s875_s1 + $0x230] sm:$0xff]  ;;  %v94_v30 = vld [vmem:[%s875_s1 + $0x228] sm:$0xff]  ;;  %v284_v32 = vld [vmem:[%s876_s2 + $0x60] sm:$0xff] }
  0x31   :  { %218 = vmatpush.msrb.mxu0 %v97_v19  ;;  %238 = vmatpush.msrb.mxu1 %v113_v20  ;;  %v111_v28 = vld [vmem:[%s875_s1 + $0x2b0] sm:$0xff]  ;;  %v110_v31 = vld [vmem:[%s875_s1 + $0x2a8] sm:$0xff]  ;;  %v93_v33 = vld [vmem:[%s875_s1 + $0x220] sm:$0xff] }
  0x32   :  { %266 = vmatpush.msrb.mxu2 %v121_v21  ;;  %293 = vmatpush.msrb.mxu3 %v287_v22  ;;  %v109_v34 = vld [vmem:[%s875_s1 + $0x2a0] sm:$0xff]  ;;  %v283_v35 = vld [vmem:[%s876_s2 + $0x58] sm:$0xff]  ;;  %v282_v38 = vld [vmem:[%s876_s2 + $0x50] sm:$0xff] }
  0x33   :  { %219 = vmatpush.msrb.mxu0 %v96_v23  ;;  %239 = vmatpush.msrb.mxu1 %v112_v24  ;;  %v92_v36 = vld [vmem:[%s875_s1 + $0x218] sm:$0xff]  ;;  %v91_v39 = vld [vmem:[%s875_s1 + $0x210] sm:$0xff]  ;;  %v281_v41 = vld [vmem:[%s876_s2 + $0x48] sm:$0xff] }
  0x34   :  { %374 = vmatmul.msk.f32.vlgmr.msrb.gmra.mxu2 %vm127_vm0, %v24_v25  ;;  %294 = vmatpush.msrb.mxu3 %v286_v26  ;;  %v108_v37 = vld [vmem:[%s875_s1 + $0x298] sm:$0xff]  ;;  %v107_v40 = vld [vmem:[%s875_s1 + $0x290] sm:$0xff]  ;;  %v90_v42 = vld [vmem:[%s875_s1 + $0x208] sm:$0xff] }
  0x35   :  { %220 = vmatpush.msrb.mxu0 %v95_v27  ;;  %240 = vmatpush.msrb.mxu1 %v111_v28  ;;  %v106_v43 = vld [vmem:[%s875_s1 + $0x288] sm:$0xff]  ;;  %v89_v44 = vld [vmem:[%s875_s1 + $0x200] sm:$0xff]  ;;  %v279_v49 = vld [vmem:[%s876_s2 + $0x38] sm:$0xff] }
  0x36   :  { %295 = vmatpush.msrb.mxu3 %v285_v29  ;;  %v105_v45 = vld [vmem:[%s875_s1 + $0x280] sm:$0xff]  ;;  %v23_v47 = vld [vmem:[%s874_s0 + $0x28] sm:$0xff]  ;;  %v278_v50 = vld [vmem:[%s876_s2 + $0x30] sm:$0xff] }
  0x37   :  { %221 = vmatpush.msrb.mxu0 %v94_v30  ;;  %241 = vmatpush.msrb.mxu1 %v110_v31  ;;  %v22_v46 = vld [vmem:[%s874_s0 + $0x20] sm:$0xff]  ;;  %v277_v51 = vld [vmem:[%s876_s2 + $0x28] sm:$0xff]  ;;  %v275_v53 = vld [vmem:[%s876_s2 + $0x18] sm:$0xff] }
  0x38   :  { %296 = vmatpush.msrb.mxu3 %v284_v32  ;;  %v280_v48 = vld [vmem:[%s876_s2 + $0x40] sm:$0xff]  ;;  %v274_v54 = vld [vmem:[%s876_s2 + $0x10] sm:$0xff]  ;;  %v273_v55 = vld [vmem:[%s876_s2 + $0x8] sm:$0xff] }
  0x39   :  { %222 = vmatpush.msrb.mxu0 %v93_v33  ;;  %242 = vmatpush.msrb.mxu1 %v109_v34  ;;  %v276_v52 = vld [vmem:[%s876_s2 + $0x20] sm:$0xff]  ;;  %v391_v57 = vld [vmem:[%s876_s2 + $0xf8] sm:$0xff]  ;;  %v390_v58 = vld [vmem:[%s876_s2 + $0xf0] sm:$0xff] }
  0x3a   :  { %297 = vmatpush.msrb.mxu3 %v283_v35  ;;  %v272_v56 = vld [vmem:[%s876_s2] sm:$0xff]  ;;  %336 = vmatpush.msra.mxu2 %v391_v57  ;;  %v389_v59 = vld [vmem:[%s876_s2 + $0xe8] sm:$0xff]  ;;  %v387_v63 = vld [vmem:[%s876_s2 + $0xd8] sm:$0xff] }
  0x3b   :  { %223 = vmatpush.msrb.mxu0 %v92_v36  ;;  %243 = vmatpush.msrb.mxu1 %v108_v37  ;;  %v394_v60 = vld [vmem:[%s877_s3] ss:$0 sm:$0xff]  ;;  %v386_v1 = vld [vmem:[%s876_s2 + $0xd0] sm:$0xff]  ;;  %v385_v3 = vld [vmem:[%s876_s2 + $0xc8] sm:$0xff] }
  0x3c   :  { %298 = vmatpush.msrb.mxu3 %v282_v38  ;;  %337 = vmatpush.msra.mxu2 %v390_v58  ;;  %v388_v61 = vld [vmem:[%s876_s2 + $0xe0] sm:$0xff]  ;;  %v383_v7 = vld [vmem:[%s876_s2 + $0xb8] sm:$0xff]  ;;  %v382_v9 = vld [vmem:[%s876_s2 + $0xb0] sm:$0xff] }
  0x3d   :  { %224 = vmatpush.msrb.mxu0 %v91_v39  ;;  %244 = vmatpush.msrb.mxu1 %v107_v40  ;;  %v384_v5 = vld [vmem:[%s876_s2 + $0xc0] sm:$0xff]  ;;  %v381_v11 = vld [vmem:[%s876_s2 + $0xa8] sm:$0xff]  ;;  %v379_v21 = vld [vmem:[%s876_s2 + $0x98] sm:$0xff] }
  0x3e   :  { %299 = vmatpush.msrb.mxu3 %v281_v41  ;;  %338 = vmatpush.msra.mxu2 %v389_v59  ;;  %v380_v20 = vld [vmem:[%s876_s2 + $0xa0] sm:$0xff]  ;;  %v378_v22 = vld [vmem:[%s876_s2 + $0x90] sm:$0xff]  ;;  %v377_v23 = vld [vmem:[%s876_s2 + $0x88] sm:$0xff] }
  0x3f   :  { %225 = vmatpush.msrb.mxu0 %v90_v42  ;;  %245 = vmatpush.msrb.mxu1 %v106_v43  ;;  %v376_v24 = vld [vmem:[%s876_s2 + $0x80] sm:$0xff] }
  0x40   :  { %300 = vmatpush.msrb.mxu3 %v280_v48  ;;  %339 = vmatpush.msra.mxu2 %v388_v61  ;;  %v395_v25 = vld [vmem:[%s877_s3 + $0x1] ss:$0 sm:$0xff]  ;;  %v396_v29 = vld [vmem:[%s877_s3 + $0x2] ss:$0 sm:$0xff] }
  0x41   :  { %226 = vmatpush.msrb.mxu0 %v89_v44  ;;  %246 = vmatpush.msrb.mxu1 %v105_v45 }
  0x42   :  { %227 = vmatmul.f32.vlgmr.msrb.gmra.mxu0 %v22_v46  ;;  %247 = vmatmul.f32.vlgmr.msrb.gmra.mxu1 %v23_v47 }
  0x43   :  { %301 = vmatpush.msrb.mxu3 %v279_v49  ;;  %340 = vmatpush.msra.mxu2 %v387_v63 }
  0x45   :  { %302 = vmatpush.msrb.mxu3 %v278_v50  ;;  %341 = vmatpush.msra.mxu2 %v386_v1 }
  0x47   :  { %303 = vmatpush.msrb.mxu3 %v277_v51  ;;  %342 = vmatpush.msra.mxu2 %v385_v3 }
  0x49   :  { %304 = vmatpush.msrb.mxu3 %v276_v52  ;;  %343 = vmatpush.msra.mxu2 %v384_v5 }
  0x4b   :  { %305 = vmatpush.msrb.mxu3 %v275_v53  ;;  %344 = vmatpush.msra.mxu2 %v383_v7 }
  0x4d   :  { %306 = vmatpush.msrb.mxu3 %v274_v54  ;;  %345 = vmatpush.msra.mxu2 %v382_v9 }
  0x4f   :  { %307 = vmatpush.msrb.mxu3 %v273_v55  ;;  %346 = vmatpush.msra.mxu2 %v381_v11 }
  0x51   :  { %308 = vmatpush.msrb.mxu3 %v272_v56  ;;  %347 = vmatpush.msra.mxu2 %v380_v20 }
  0x53   :  { %348 = vmatpush.msra.mxu2 %v379_v21 }
  0x55   :  { %349 = vmatpush.msra.mxu2 %v378_v22 }
  0x57   :  { %350 = vmatpush.msra.mxu2 %v377_v23 }
  0x59   :  { %351 = vmatpush.msra.mxu2 %v376_v24 }
  0xab   :  { %v148_v62 = vpop.f32.mrf.mxu0 }
  0xac   :  { %v149_v0 = vadd.f32 %v394_v60, %v148_v62 }
  0xad   :  { %v168_v2 = vpop.f32.mrf.mxu1 }
  0xae   :  { %v169_v4 = vadd.f32 %v168_v2, %v149_v0 }
  0xaf   :  { %v188_v6 = vpop.f32.mrf.mxu2 }
  0xb0   :  { %v189_v8 = vadd.f32 %v188_v6, %v169_v4 }
  0xb3   :  { %v208_v10 = vpop.f32.mrf.mxu3 }
  0xb4   :  { %v209_v12 = vadd.f32 %v208_v10, %v189_v8 }
  0xb7   :  { %v268_v16 = vpop.f32.mrf.mxu2 }
  0xbf   :  { %v228_v13 = vpop.f32.mrf.mxu0  ;;  %v248_v14 = vpop.f32.mrf.mxu1 }
  0xc0   :  { %v229_v15 = vadd.f32 %v228_v13, %v209_v12 }
  0xc2   :  { %v249_v17 = vadd.f32 %v248_v14, %v229_v15 }
  0xc4   :  { %v269_v18 = vadd.f32 %v268_v16, %v249_v17 }
  0xc6   :  { %v271_v19 = vmax.f32 %v269_v18, 0.0 }
  0xc8   :  { %309 = vmatmul.f32.vlgmr.msrb.gmra.mxu3 %v271_v19 }
 0x14b   :  { %v310_v26 = vpop.f32.mrf.mxu3 }
 0x14c   :  { %v311_v27 = vadd.f32 %v395_v25, %v310_v26 }
 0x14e   :  { %397 = vtanh.f32 %v311_v27 }
 0x154   :  { %v398_v28 = vpop.eup %397 }
 0x155   :  { %352 = vmatmul.f32.vlgmr.msra.gmra.mxu2 %v398_v28 }
 0x1d8   :  { %v353_v30 = vpop.f32.mrf.mxu2 }
 0x1d9   :  { %v354_v31 = vadd.f32 %v396_v29, %v353_v30 }
 0x1db   :  { %v356_v32 = vmax.f32 %v354_v31, 0.0 }
 0x1dd   :  { %357 = vst [vmem:[#allocation2] sm:$0xff] %v356_v32 }
 0x1de   :  { %368 = dma.vmem_to_hbm [thread:$0]  %s364_s6, 128, %s366_s7, [#allocation3]  }
 0x1df   :  { %423 = dma.done.wait [#allocation3], 128  }
 0x1e0   :  { %424 = vsyncadd [#allocation3], 4294967168 }
 0x1e1   :  { %373 = vsyncpa [#allocation3], 1 }

</bundles_post_ra>
